<compile_context>
chip_gen: v7x
topology: tpu7x:2x2x1
jax: 0.10.0
libtpu: 0.0.40
codegen_flags: <defaults>
</compile_context>

<pallas_src>
import jax
import jax.numpy as jnp
from jax.experimental import pallas as pl
from jax.experimental.pallas import tpu as pltpu

# --- module hyper-parameters (matching ICM.__init__ defaults) ---------------
DIM_ENC = 8                       # dim_enc
ACTION_DIM = 2                    # env.action_space.shape[0] (picked small)
IN_DIM = DIM_ENC + ACTION_DIM     # F1 input: dim_enc + action_dim = 10
HID = 16                          # F1/F2 hidden width


def _round_up(x, m):
    return (x + m - 1) // m * m


def icm_forward_kernel(z_ref, w1_ref, b1_ref, w2_ref, b2_ref, w3_ref, b3_ref, o_ref):
    """f = F3( sigmoid( F2( relu( F1(z) ) ) ) ) for one batch tile."""
    # F1 + ReLU
    h = jnp.dot(z_ref[...], w1_ref[...], preferred_element_type=jnp.float32) + b1_ref[...]
    h = jnp.maximum(h, 0.0)
    # F2 + sigmoid (exact; exp lands on the otherwise-idle EUP slot, kernel is DMA-bound)
    h = jnp.dot(h, w2_ref[...], preferred_element_type=jnp.float32) + b2_ref[...]
    h = 1.0 / (1.0 + jnp.exp(-h))
    # F3 — narrow (tb, dim_enc) store; total output bytes are minimal.
    o_ref[...] = (
        jnp.dot(h, w3_ref[...], preferred_element_type=jnp.float32) + b3_ref[...]
    ).astype(o_ref.dtype)


def icm_forward(z, params, *, tile_b=2048):
    """Pallas implementation of ICM.forward. z: [B, dim_enc + action_dim] float32."""
    (w1, b1), (w2, b2), (w3, b3) = params
    B, in_dim = z.shape
    hid = w1.shape[1]
    dim_enc = w3.shape[1]

    # Batch tile: as large as requested (sweep 1024-8192 for big B), rounded to the
    # 8-sublane granule, but capped at ~B/2 so the grid has >= 2 steps whenever the
    # batch allows it (v7x: two TensorCores can each take a share of the batch axis).
    two_step_cap = _round_up(pl.cdiv(B, 2), 8) if B > 8 else 8
    tb = max(8, min(tile_b, two_step_cap))
    grid = (pl.cdiv(B, tb),)   # last tile may be partial; Pallas masks the edge block

    const = lambda shape: pl.BlockSpec(shape, lambda i: (0, 0))  # VMEM-resident operand

    out = pl.pallas_call(
        icm_forward_kernel,
        out_shape=jax.ShapeDtypeStruct((B, dim_enc), jnp.float32),
        grid=grid,
        in_specs=[
            pl.BlockSpec((tb, in_dim), lambda i: (i, 0)),   # z: streamed per batch tile
            const((in_dim, hid)), const((1, hid)),          # F1 weight / bias
            const((hid, hid)),    const((1, hid)),          # F2 weight / bias
            const((hid, dim_enc)), const((1, dim_enc)),     # F3 weight / bias
        ],
        out_specs=pl.BlockSpec((tb, dim_enc), lambda i: (i, 0)),
        compiler_params=pltpu.CompilerParams(
            dimension_semantics=("parallel",),   # v7x: shard batch tiles over both TCs
        ),
    )(z, w1, b1, w2, b2, w3, b3)

    return out


# --- deterministic parameter init (mimics nn.Linear default uniform init) ---
def linear_params(key, fan_in, fan_out):
    kw, kb = jax.random.split(key)
    bound = 1.0 / float(fan_in) ** 0.5
    w = jax.random.uniform(kw, (fan_in, fan_out), jnp.float32, -bound, bound)
    b = jax.random.uniform(kb, (1, fan_out), jnp.float32, -bound, bound)
    return w, b


def icm_forward_ref(z, params):
    """Plain-JAX reference of ICM.forward for correctness checking."""
    (w1, b1), (w2, b2), (w3, b3) = params
    f = jnp.maximum(z @ w1 + b1, 0.0)
    f = jax.nn.sigmoid(f @ w2 + b2)
    return f @ w3 + b3


if __name__ == "__main__":
    root = jax.random.PRNGKey(0)
    k_z, k1, k2, k3 = jax.random.split(root, 4)

    # Small demo batch, deliberately NOT a multiple of the tile so the ragged
    # edge-block path (masked last tile, no jnp.pad copy) is exercised.
    BATCH = 100
    z = jax.random.normal(k_z, (BATCH, IN_DIM), jnp.float32)   # concat([PHI, A], dim=1)

    params = (
        linear_params(k1, IN_DIM, HID),    # F1: Linear(dim_enc + action_dim, 16)
        linear_params(k2, HID, HID),       # F2: Linear(16, 16)
        linear_params(k3, HID, DIM_ENC),   # F3: Linear(16, dim_enc)
    )

    out = jax.block_until_ready(icm_forward(z, params))
    ref = icm_forward_ref(z, params)

    assert out.shape == (BATCH, DIM_ENC)
    assert jnp.allclose(out, ref, atol=1e-5, rtol=1e-5), (
        "Pallas output mismatch vs reference: max|diff|=%e"
        % float(jnp.max(jnp.abs(out - ref)))
    )

    print("KERNEL_OK")
</pallas_src>

<mosaic_0001>
module attributes {stable_mosaic.version = 11 : i64} {
  func.func @icm_forward_kernel(%arg0: i32, %arg1: memref<56x10xf32, #tpu.memory_space<vmem>>, %arg2: memref<10x16xf32, #tpu.memory_space<vmem>>, %arg3: memref<1x16xf32, #tpu.memory_space<vmem>>, %arg4: memref<16x16xf32, #tpu.memory_space<vmem>>, %arg5: memref<1x16xf32, #tpu.memory_space<vmem>>, %arg6: memref<16x8xf32, #tpu.memory_space<vmem>>, %arg7: memref<1x8xf32, #tpu.memory_space<vmem>>, %arg8: memref<56x8xf32, #tpu.memory_space<vmem>>) attributes {dimension_semantics = [#tpu.dimension_semantics<parallel>], iteration_bounds = array<i64: 2>, scalar_prefetch = 0 : i64, scratch_operands = 0 : i64, tpu.core_type = #tpu.core_type<tc>, window_params = [{transform_indices = @transform_0, window_bounds = array<i64: 56, 10>}, {pipeline_mode = #tpu.pipeline_mode<synchronous>, transform_indices = @transform_1, window_bounds = array<i64: 10, 16>}, {pipeline_mode = #tpu.pipeline_mode<synchronous>, transform_indices = @transform_2, window_bounds = array<i64: 1, 16>}, {pipeline_mode = #tpu.pipeline_mode<synchronous>, transform_indices = @transform_3, window_bounds = array<i64: 16, 16>}, {pipeline_mode = #tpu.pipeline_mode<synchronous>, transform_indices = @transform_4, window_bounds = array<i64: 1, 16>}, {pipeline_mode = #tpu.pipeline_mode<synchronous>, transform_indices = @transform_5, window_bounds = array<i64: 16, 8>}, {pipeline_mode = #tpu.pipeline_mode<synchronous>, transform_indices = @transform_6, window_bounds = array<i64: 1, 8>}, {transform_indices = @transform_7, window_bounds = array<i64: 56, 8>}]} {
    %c0 = arith.constant 0 : index
    %c0_0 = arith.constant 0 : index
    %0 = vector.load %arg1[%c0, %c0_0] : memref<56x10xf32, #tpu.memory_space<vmem>>, vector<56x10xf32>
    %c0_1 = arith.constant 0 : index
    %c0_2 = arith.constant 0 : index
    %1 = vector.load %arg2[%c0_1, %c0_2] : memref<10x16xf32, #tpu.memory_space<vmem>>, vector<10x16xf32>
    %cst = arith.constant dense<0.000000e+00> : vector<56x16xf32>
    %2 = tpu.matmul %0, %1, %cst {dimension_numbers = #tpu.dot_dimension_numbers<[1], [0], [0], [1], [0, 0, 1, 1], [], []>} : vector<56x10xf32>, vector<10x16xf32>, vector<56x16xf32> -> vector<56x16xf32>
    %c0_3 = arith.constant 0 : index
    %c0_4 = arith.constant 0 : index
    %3 = vector.load %arg3[%c0_3, %c0_4] : memref<1x16xf32, #tpu.memory_space<vmem>>, vector<1x16xf32>
    %4 = vector.broadcast %3 : vector<1x16xf32> to vector<56x16xf32>
    %5 = arith.addf %2, %4 : vector<56x16xf32>
    %cst_5 = arith.constant 0.000000e+00 : f32
    %6 = vector.broadcast %cst_5 : f32 to vector<56x16xf32>
    %7 = arith.maximumf %5, %6 : vector<56x16xf32>
    %c0_6 = arith.constant 0 : index
    %c0_7 = arith.constant 0 : index
    %8 = vector.load %arg4[%c0_6, %c0_7] : memref<16x16xf32, #tpu.memory_space<vmem>>, vector<16x16xf32>
    %cst_8 = arith.constant dense<0.000000e+00> : vector<56x16xf32>
    %9 = tpu.matmul %7, %8, %cst_8 {dimension_numbers = #tpu.dot_dimension_numbers<[1], [0], [0], [1], [0, 0, 1, 1], [], []>} : vector<56x16xf32>, vector<16x16xf32>, vector<56x16xf32> -> vector<56x16xf32>
    %c0_9 = arith.constant 0 : index
    %c0_10 = arith.constant 0 : index
    %10 = vector.load %arg5[%c0_9, %c0_10] : memref<1x16xf32, #tpu.memory_space<vmem>>, vector<1x16xf32>
    %11 = vector.broadcast %10 : vector<1x16xf32> to vector<56x16xf32>
    %12 = arith.addf %9, %11 : vector<56x16xf32>
    %cst_11 = arith.constant 0.000000e+00 : f32
    %13 = vector.broadcast %cst_11 : f32 to vector<56x16xf32>
    %14 = arith.subf %13, %12 : vector<56x16xf32>
    %15 = math.exp %14 : vector<56x16xf32>
    %cst_12 = arith.constant 1.000000e+00 : f32
    %16 = vector.broadcast %cst_12 : f32 to vector<56x16xf32>
    %17 = arith.addf %16, %15 : vector<56x16xf32>
    %cst_13 = arith.constant 1.000000e+00 : f32
    %18 = vector.broadcast %cst_13 : f32 to vector<56x16xf32>
    %19 = arith.divf %18, %17 : vector<56x16xf32>
    %c0_14 = arith.constant 0 : index
    %c0_15 = arith.constant 0 : index
    %20 = vector.load %arg6[%c0_14, %c0_15] : memref<16x8xf32, #tpu.memory_space<vmem>>, vector<16x8xf32>
    %cst_16 = arith.constant dense<0.000000e+00> : vector<56x8xf32>
    %21 = tpu.matmul %19, %20, %cst_16 {dimension_numbers = #tpu.dot_dimension_numbers<[1], [0], [0], [1], [0, 0, 1, 1], [], []>} : vector<56x16xf32>, vector<16x8xf32>, vector<56x8xf32> -> vector<56x8xf32>
    %c0_17 = arith.constant 0 : index
    %c0_18 = arith.constant 0 : index
    %22 = vector.load %arg7[%c0_17, %c0_18] : memref<1x8xf32, #tpu.memory_space<vmem>>, vector<1x8xf32>
    %23 = vector.broadcast %22 : vector<1x8xf32> to vector<56x8xf32>
    %24 = arith.addf %21, %23 : vector<56x8xf32>
    %c0_19 = arith.constant 0 : index
    %c0_20 = arith.constant 0 : index
    %25 = vector.load %arg8[%c0_19, %c0_20] : memref<56x8xf32, #tpu.memory_space<vmem>>, vector<56x8xf32>
    tpu.vector_store %arg8[%c0_19, %c0_20], %24 {strides = array<i32>} : memref<56x8xf32, #tpu.memory_space<vmem>>, vector<56x8xf32>,
    return
  }
  func.func @transform_0(%arg0: i32) -> (i32, i32) {
    %c0_i32 = arith.constant 0 : i32
    %c0_i32_0 = arith.constant 0 : i32
    return %arg0, %c0_i32 : i32, i32
  }
  func.func @transform_1(%arg0: i32) -> (i32, i32) {
    %c0_i32 = arith.constant 0 : i32
    %c0_i32_0 = arith.constant 0 : i32
    %c0_i32_1 = arith.constant 0 : i32
    return %c0_i32, %c0_i32_0 : i32, i32
  }
  func.func @transform_2(%arg0: i32) -> (i32, i32) {
    %c0_i32 = arith.constant 0 : i32
    %c0_i32_0 = arith.constant 0 : i32
    %c0_i32_1 = arith.constant 0 : i32
    return %c0_i32, %c0_i32_0 : i32, i32
  }
  func.func @transform_3(%arg0: i32) -> (i32, i32) {
    %c0_i32 = arith.constant 0 : i32
    %c0_i32_0 = arith.constant 0 : i32
    %c0_i32_1 = arith.constant 0 : i32
    return %c0_i32, %c0_i32_0 : i32, i32
  }
  func.func @transform_4(%arg0: i32) -> (i32, i32) {
    %c0_i32 = arith.constant 0 : i32
    %c0_i32_0 = arith.constant 0 : i32
    %c0_i32_1 = arith.constant 0 : i32
    return %c0_i32, %c0_i32_0 : i32, i32
  }
  func.func @transform_5(%arg0: i32) -> (i32, i32) {
    %c0_i32 = arith.constant 0 : i32
    %c0_i32_0 = arith.constant 0 : i32
    %c0_i32_1 = arith.constant 0 : i32
    return %c0_i32, %c0_i32_0 : i32, i32
  }
  func.func @transform_6(%arg0: i32) -> (i32, i32) {
    %c0_i32 = arith.constant 0 : i32
    %c0_i32_0 = arith.constant 0 : i32
    %c0_i32_1 = arith.constant 0 : i32
    return %c0_i32, %c0_i32_0 : i32, i32
  }
  func.func @transform_7(%arg0: i32) -> (i32, i32) {
    %c0_i32 = arith.constant 0 : i32
    %c0_i32_0 = arith.constant 0 : i32
    return %arg0, %c0_i32 : i32, i32
  }
}

</mosaic_0001>

<bundles_post_ra>
// kernel: tpu_custom_call.1
= control target key start
LH: loop header
LB: loop body
LE: loop exit
PB: predicated region body
PF: predicated region fallthrough
CT: control target
= control target key end

     0   :  { %s1416_s24 = smov 0   ;;  %s1418_s25 = smov 0   ;;  %s1616_s0 = inlined_call_operand.vmem [shape: f32[100,10], index: 0, kind: input, shape index: {}]   ;;  %s1617_s1 = inlined_call_operand.vmem [shape: f32[10,16], index: 1, kind: input, shape index: {}]   ;;  %s1618_s2 = inlined_call_operand.vmem [shape: f32[1,16], index: 2, kind: input, shape index: {}]   ;;  %s1619_s3 = inlined_call_operand.vmem [shape: f32[16,16], index: 3, kind: input, shape index: {}]   ;;  %s1620_s4 = inlined_call_operand.vmem [shape: f32[1,16], index: 4, kind: input, shape index: {}]   ;;  %s1621_s5 = inlined_call_operand.vmem [shape: f32[16,8], index: 5, kind: input, shape index: {}]   ;;  %s1622_s6 = inlined_call_operand.vmem [shape: f32[1,8], index: 6, kind: input, shape index: {}]   ;;  %s1623_s7 = inlined_call_operand.vmem [shape: f32[100,8], index: 7, kind: output, shape index: {}]  }
   0x1   :  { %s1420_s26 = smov 0  }
   0x2 LB: > { %s1429_s27 = sadd.s32 4294967295, %s1338_s26   ;;  %s1431_s28 = sadd.s32 1, %s1338_s26   ;;  %s1338_s26 = sphi %s1420_s26, %s1630_s26   ;;  %s1334_s25 = sphi %s1418_s25, %s1629_s25   ;;  %s1330_s24 = sphi %s1416_s24, %s1628_s24  }
   0x3   : > { %s173_s29 = ssub.s32 %s1338_s26, %s1431_s28  ;;  %s176_s30 = sadd.s32 1, %s1334_s25 }
   0x4   : > { %p174_p0 = scmp.eq.s32.totalorder %s173_s29, 0  ;;  %p186_p1 = scmp.ne.s32.totalorder %s1334_s25, %s1330_s24 }
   0x5   : > { %p187_p2 = scmp.eq.s32.totalorder %s1429_s27, 1  ;;  %p1004_p3 = scmp.ge.s32.totalorder %s1338_s26, 1 }
   0x6   : > { %s1439_s8 = scalar_select %p174_p0, %s1334_s25, %s176_s30  }
   0x7   : > { %p1441_p4 = por %p187_p2, %p186_p1  ;;  %p246_p5 = scmp.lt.s32.totalorder %s1338_s26, 3 }
   0x9   : > { %p247_p6 = pnand %p1004_p3, %p246_p5 }
   0xa   : > { %v307_v0 = vld [vmem:[%s1617_s1] sm:$0xff] (!%p247_p6)  ;;  %v308_v1 = vld [vmem:[%s1617_s1 + $0x8] sm:$0x3] (!%p247_p6)  ;;  %vm338_vm0 = vcmask (!%p247_p6), 1041408   ;;  %v1372_v2 = vmov (!%p247_p6), 0.0|0.0   ;;  %vm1373_vm1 = vmmov (!%p247_p6), 1  }
   0xb   : > { %250 = sbr.rel (%p247_p6) target bundleno = 781 (0x30d), region = 48  ;;  %1146 = vmatprep.subr.bf16.mxu0 (!%p247_p6), %v1372_v2  ;;  %v1147_v3 = vpack.c.bf16 (!%p247_p6), %v308_v1, %v307_v0  ;;  %vm1148_vm2 = vmpackc.low (!%p247_p6), %vm338_vm0, %vm1373_vm1  ;;  %1156 = vmatprep.subr.bf16.mxu1 (!%p247_p6), %v1372_v2  ;;  %vm1374_vm3 = vmmov (!%p247_p6), 0   ;;  %v1375_v4 = vmov (!%p247_p6), 0.0   ;;  %v449_v5 = vld [vmem:[%s1619_s3] sm:$0xff] (!%p247_p6)  ;;  %v450_v6 = vld [vmem:[%s1619_s3 + $0x8] sm:$0xff] (!%p247_p6)  ;;  %vm316_vm4 = vcmask (!%p247_p6), 80896  }
   0xc   : > { %s1452_s14 = smul.u32 (!%p247_p6), 7, %s1429_s27  ;;  %1075 = vmatprep.mubr.msk.f32.mxu0 (!%p247_p6), %vm1374_vm3, %v1375_v4  ;;  %1087 = vmatprep.mubr.msk.f32.mxu1 (!%p247_p6), %vm1374_vm3, %v1375_v4  ;;  %v1151_v7 = vpack.c.bf16 (!%p247_p6), %v450_v6, %v449_v5  ;;  %v1006_v15 = vld [vmem:[%s1618_s2] ss:$0 sm:$0xff] (!%p247_p6)  ;;  %vm458_vm5 = vcmask (!%p247_p6), 130048   ;;  %v623_v45 = vld [vmem:[%s1621_s5 + $0x8] sm:$0xff] (!%p247_p6)  ;;  %s278_s16 = sand.u32 (!%p247_p6), 1, %s1330_s24  }
   0xd   : > { %1149 = vmatpush3.bf16.msk.msra.mxu0 (!%p247_p6), %vm1148_vm2, %v1147_v3  ;;  %1157 = vmatpush3.bf16.msk.msra.mxu1 (!%p247_p6), %vm1148_vm2, %v1147_v3  ;;  %v622_v44 = vld [vmem:[%s1621_s5] sm:$0xff] (!%p247_p6)  ;;  %s1158_s17 = smul.u32 (!%p247_p6), 56, %s278_s16  ;;  %vm752_vm6 = vcmask (!%p247_p6), 64512  }
   0xe   : > { %p286_p7 = scmp.lt.s32.totalorder (!%p247_p6), %s1452_s14, 12  ;;  %1150 = vmatprep.subr.bf16.mxu1 (!%p247_p6), %v1372_v2  ;;  %1153 = vmatprep.subr.bf16.mxu0 (!%p247_p6), %v1372_v2  ;;  %v1154_v46 = vpack.c.bf16 (!%p247_p6), %v623_v45, %v622_v44  ;;  %v1015_v47 = vld [vmem:[%s1620_s4] ss:$0 sm:$0xff] (!%p247_p6) }
  0x12   : > { %s287_s15 = scalar_select %p286_p7, %s1452_s14, 12 }
  0x13   : > { %s768_s24 = ssub.s32 (%p1441_p4), 13, %s1452_s14  ;;  %s1043_s21 = smul.u32 (%p1441_p4), 56, %s1429_s27 }
  0x14   : > { %s1005_s20 = sshll.u32 %s287_s15, 3  ;;  %p769_p8 = scmp.lt.s32.totalorder (%p1441_p4), %s768_s24, 7 }
  0x15   : > { %s289_s23 = scalar_lea.vmem %s1616_s0, %s1005_s20  ;;  %s1544_s20 = scalar_lea.vmem [#allocation2], %s1158_s17  }
  0x16   : > { %v300_v8 = vld [vmem:[%s289_s23] sm:$0xff]  ;;  %v301_v10 = vld [vmem:[%s289_s23 + $0x8] sm:$0xff]  ;;  %v302_v12 = vld [vmem:[%s289_s23 + $0x10] sm:$0xff]  ;;  %s1567_s26 = scalar_lea.vmem (%p1441_p4), %s1623_s7, %s1043_s21  }
  0x17   : > { %1076 = vmatmul.mubr.msk.f32.vlgmr.msra.gmra.mrb[0].mxu0 %vm316_vm4, %v300_v8  ;;  %v304_v9 = vld [vmem:[%s289_s23 + $0x20] sm:$0xff]  ;;  %v305_v11 = vld [vmem:[%s289_s23 + $0x28] sm:$0xff]  ;;  %v306_v13 = vld [vmem:[%s289_s23 + $0x30] sm:$0xff] }
  0x18   : > { %1078 = vmatprep.mubr.msk.f32.mxu0 %vm1374_vm3, %v1375_v4  ;;  %1088 = vmatmul.mubr.msk.f32.vlgmr.msra.gmra.mrb[0].mxu1 %vm316_vm4, %v304_v9  ;;  %v303_v14 = vld [vmem:[%s289_s23 + $0x18] sm:$0xff] }
  0x19   : > { %1090 = vmatprep.mubr.msk.f32.mxu1 %vm1374_vm3, %v1375_v4  ;;  %1152 = vmatpush3.bf16.msra.mxu1 %v1151_v7 }
  0x1a   : > { %1155 = vmatpush3.bf16.msra.mxu0 %v1154_v46 }
  0x1b   : > { %1079 = vmatmul.mubr.msk.f32.gmra.mrb[2].mxu0 %vm316_vm4, %v301_v10 }
  0x1c   : > { %1081 = vmatprep.mubr.msk.f32.mxu0 %vm1374_vm3, %v1375_v4  ;;  %1091 = vmatmul.mubr.msk.f32.gmra.mrb[2].mxu1 %vm316_vm4, %v305_v11 }
  0x1d   : > { %1093 = vmatprep.mubr.msk.f32.mxu1 %vm1374_vm3, %v1375_v4 }
  0x1f   : > { %1082 = vmatmul.mubr.msk.f32.gmra.mrb[4].mxu0 %vm316_vm4, %v302_v12 }
  0x20   : > { %1084 = vmatprep.mubr.msk.f32.mxu0 %vm1374_vm3, %v1375_v4  ;;  %1094 = vmatmul.mubr.msk.f32.gmra.mrb[4].mxu1 %vm316_vm4, %v306_v13 }
  0x21   : > { %1100 = vmatprep.mubr.msk.f32.mxu1 %vm1374_vm3, %v1375_v4 }
  0x23   : > { %1085 = vmatmul.mubr.msk.f32.gmra.mrb[6].mxu0 %vm316_vm4, %v303_v14 }
  0x24   : > { %1125 = vmatprep.mubr.msk.f32.mxu0 %vm1374_vm3, %v1375_v4 }
  0xea   : > { %v408_v16 = vpop.f32.mrb[0].mxu0 }
  0xeb   : > { %v409_v17 = vadd.f32 %v1006_v15, %v408_v16  ;;  %v1077_v18 = vpop.f32.mrb[1].mxu0  ;;  %v428_v19 = vpop.f32.mrb[0].mxu1 }
  0xec   : > { %v1089_v20 = vpop.f32.mrb[1].mxu1  ;;  %v429_v37 = vadd.f32 %v1006_v15, %v428_v19 }
  0xed   : > { %v442_v21 = vmax.f32 %v409_v17, 0.0 }
  0xee   : > { %v413_v22 = vpop.f32.mrb[2].mxu0  ;;  %v446_v39 = vmax.f32 %v429_v37, 0.0 }
  0xef   : > { %v414_v23 = vadd.f32 %v1006_v15, %v413_v22  ;;  %v1080_v24 = vpop.f32.mrb[3].mxu0  ;;  %1101 = vmatmul.mubr.msk.f32.vlgmr.msra.gmra.mrb[6].mxu1 %vm458_vm5, %v442_v21  ;;  %v433_v25 = vpop.f32.mrb[2].mxu1 }
  0xf0   : > { %1103 = vmatprep.mubr.msk.f32.mxu1 %vm1374_vm3, %v1375_v4  ;;  %v1092_v26 = vpop.f32.mrb[3].mxu1  ;;  %v434_v40 = vadd.f32 %v1006_v15, %v433_v25 }
  0xf1   : > { %v443_v27 = vmax.f32 %v414_v23, 0.0 }
  0xf2   : > { %v418_v28 = vpop.f32.mrb[4].mxu0  ;;  %v447_v41 = vmax.f32 %v434_v40, 0.0 }
  0xf3   : > { %v419_v29 = vadd.f32 %v1006_v15, %v418_v28  ;;  %v1083_v30 = vpop.f32.mrb[5].mxu0  ;;  %1104 = vmatmul.mubr.msk.f32.gmra.mrb[8].mxu1 %vm458_vm5, %v443_v27  ;;  %v438_v31 = vpop.f32.mrb[4].mxu1 }
  0xf4   : > { %1106 = vmatprep.mubr.msk.f32.mxu1 %vm1374_vm3, %v1375_v4  ;;  %v1095_v32 = vpop.f32.mrb[5].mxu1  ;;  %v439_v42 = vadd.f32 %v1006_v15, %v438_v31 }
  0xf5   : > { %v444_v33 = vmax.f32 %v419_v29, 0.0 }
  0xf6   : > { %v423_v34 = vpop.f32.mrb[6].mxu0  ;;  %v448_v43 = vmax.f32 %v439_v42, 0.0 }
  0xf7   : > { %v424_v35 = vadd.f32 %v1006_v15, %v423_v34  ;;  %v1086_v36 = vpop.f32.mrb[7].mxu0  ;;  %1107 = vmatmul.mubr.msk.f32.gmra.mrb[10].mxu1 %vm458_vm5, %v444_v33 }
  0xf8   : > { %1109 = vmatprep.mubr.msk.f32.mxu1 %vm1374_vm3, %v1375_v4 }
  0xf9   : > { %v445_v38 = vmax.f32 %v424_v35, 0.0 }
  0xfb   : > { %1110 = vmatmul.mubr.msk.f32.gmra.mrb[12].mxu1 %vm458_vm5, %v445_v38 }
  0xfc   : > { %1112 = vmatprep.mubr.msk.f32.mxu1 %vm1374_vm3, %v1375_v4 }
  0xff   : > { %1113 = vmatmul.mubr.msk.f32.gmra.mrb[14].mxu1 %vm458_vm5, %v446_v39 }
 0x100   : > { %1115 = vmatprep.mubr.msk.f32.mxu1 %vm1374_vm3, %v1375_v4 }
 0x103   : > { %1116 = vmatmul.mubr.msk.f32.gmra.mrb[16].mxu1 %vm458_vm5, %v447_v41  ;;  %v1023_v41 = vld [vmem:[%s1622_s6] ss:$0 sm:$0xff] }
 0x104   : > { %1118 = vmatprep.mubr.msk.f32.mxu1 %vm1374_vm3, %v1375_v4 }
 0x107   : > { %1119 = vmatmul.mubr.msk.f32.gmra.mrb[18].mxu1 %vm458_vm5, %v448_v43 }
 0x1c2   : > { %v546_v48 = vpop.f32.mrb[6].mxu1 }
 0x1c3   : > { %v547_v49 = vadd.f32 %v1015_v47, %v546_v48  ;;  %v1102_v50 = vpop.f32.mrb[7].mxu1 }
 0x1c5   : > { %v580_v51 = vsub.f32 0.0, %v547_v49 }
 0x1c6   : > { %v551_v52 = vpop.f32.mrb[8].mxu1 }
 0x1c7   : > { %v587_v53 = vmul.f32 1.442695, %v580_v51  ;;  %v552_v54 = vadd.f32 %v1015_v47, %v551_v52  ;;  %v1105_v55 = vpop.f32.mrb[9].mxu1 }
 0x1c9   : > { %1252 = vpow2.f32 %v587_v53  ;;  %v581_v56 = vsub.f32 0.0, %v552_v54 }
 0x1ca   : > { %v556_v57 = vpop.f32.mrb[10].mxu1 }
 0x1cb   : > { %v589_v58 = vmul.f32 1.442695, %v581_v56  ;;  %v557_v59 = vadd.f32 %v1015_v47, %v556_v57  ;;  %v1108_v60 = vpop.f32.mrb[11].mxu1 }
 0x1cd   : > { %1254 = vpow2.f32 %v589_v58  ;;  %v582_v61 = vsub.f32 0.0, %v557_v59 }
 0x1ce   : > { %v561_v62 = vpop.f32.mrb[12].mxu1 }
 0x1cf   : > { %v591_v63 = vmul.f32 1.442695, %v582_v61  ;;  %v562_v0 = vadd.f32 %v1015_v47, %v561_v62  ;;  %v1111_v1 = vpop.f32.mrb[13].mxu1 }
 0x1d1   : > { %1256 = vpow2.f32 %v591_v63  ;;  %v583_v2 = vsub.f32 0.0, %v562_v0 }
 0x1d2   : > { %v566_v3 = vpop.f32.mrb[14].mxu1 }
 0x1d3   : > { %v1253_v5 = vpop.eup %1252  ;;  %v593_v6 = vmul.f32 1.442695, %v583_v2  ;;  %v567_v7 = vadd.f32 %v1015_v47, %v566_v3  ;;  %v1114_v8 = vpop.f32.mrb[15].mxu1 }
 0x1d4   : > { %v601_v9 = vadd.f32 1.0, %v1253_v5 }
 0x1d5   : > { %1258 = vpow2.f32 %v593_v6  ;;  %v584_v10 = vsub.f32 0.0, %v567_v7 }
 0x1d6   : > { %1260 = vrcp.f32 %v601_v9  ;;  %v571_v11 = vpop.f32.mrb[16].mxu1 }
 0x1d7   : > { %v1255_v12 = vpop.eup %1254  ;;  %v595_v13 = vmul.f32 1.442695, %v584_v10  ;;  %v572_v14 = vadd.f32 %v1015_v47, %v571_v11  ;;  %v1117_v15 = vpop.f32.mrb[17].mxu1 }
 0x1d8   : > { %v602_v16 = vadd.f32 1.0, %v1255_v12 }
 0x1d9   : > { %1262 = vpow2.f32 %v595_v13  ;;  %v585_v17 = vsub.f32 0.0, %v572_v14 }
 0x1da   : > { %1264 = vrcp.f32 %v602_v16  ;;  %v576_v18 = vpop.f32.mrb[18].mxu1 }
 0x1db   : > { %v1257_v19 = vpop.eup %1256  ;;  %v597_v20 = vmul.f32 1.442695, %v585_v17  ;;  %v577_v21 = vadd.f32 %v1015_v47, %v576_v18  ;;  %v1120_v22 = vpop.f32.mrb[19].mxu1 }
 0x1dc   : > { %v603_v23 = vadd.f32 1.0, %v1257_v19 }
 0x1dd   : > { %1266 = vpow2.f32 %v597_v20  ;;  %v586_v24 = vsub.f32 0.0, %v577_v21 }
 0x1de   : > { %1268 = vrcp.f32 %v603_v23 }
 0x1df   : > { %v1259_v25 = vpop.eup %1258  ;;  %v599_v26 = vmul.f32 1.442695, %v586_v24 }
 0x1e0   : > { %v1261_v27 = vpop.eup %1260  ;;  %v604_v28 = vadd.f32 1.0, %v1259_v25 }
 0x1e1   : > { %1270 = vpow2.f32 %v599_v26  ;;  %1126 = vmatmul.mubr.msk.f32.vlgmr.msra.gmra.mrb[8].mxu0 %vm458_vm5, %v1261_v27 }
 0x1e2   : > { %1272 = vrcp.f32 %v604_v28  ;;  %1128 = vmatprep.mubr.msk.f32.mxu0 %vm1374_vm3, %v1375_v4 }
 0x1e3   : > { %v1263_v29 = vpop.eup %1262 }
 0x1e4   : > { %v1265_v30 = vpop.eup %1264  ;;  %v605_v31 = vadd.f32 1.0, %v1263_v29 }
 0x1e5   : > { %1129 = vmatmul.mubr.msk.f32.gmra.mrb[10].mxu0 %vm458_vm5, %v1265_v30 }
 0x1e6   : > { %1274 = vrcp.f32 %v605_v31  ;;  %1131 = vmatprep.mubr.msk.f32.mxu0 %vm1374_vm3, %v1375_v4 }
 0x1e7   : > { %v1267_v32 = vpop.eup %1266 }
 0x1e8   : > { %v1269_v33 = vpop.eup %1268  ;;  %v606_v34 = vadd.f32 1.0, %v1267_v32 }
 0x1e9   : > { %1132 = vmatmul.mubr.msk.f32.gmra.mrb[12].mxu0 %vm458_vm5, %v1269_v33 }
 0x1ea   : > { %1276 = vrcp.f32 %v606_v34  ;;  %1134 = vmatprep.mubr.msk.f32.mxu0 %vm1374_vm3, %v1375_v4 }
 0x1eb   : > { %v1271_v35 = vpop.eup %1270 }
 0x1ec   : > { %v1273_v36 = vpop.eup %1272  ;;  %v607_v37 = vadd.f32 1.0, %v1271_v35 }
 0x1ed   : > { %1135 = vmatmul.mubr.msk.f32.gmra.mrb[14].mxu0 %vm458_vm5, %v1273_v36 }
 0x1ee   : > { %1278 = vrcp.f32 %v607_v37  ;;  %1137 = vmatprep.mubr.msk.f32.mxu0 %vm1374_vm3, %v1375_v4 }
 0x1f0   : > { %v1275_v38 = vpop.eup %1274 }
 0x1f1   : > { %1138 = vmatmul.mubr.msk.f32.gmra.mrb[16].mxu0 %vm458_vm5, %v1275_v38 }
 0x1f2   : > { %1140 = vmatprep.mubr.msk.f32.mxu0 %vm1374_vm3, %v1375_v4 }
 0x1f4   : > { %v1277_v39 = vpop.eup %1276 }
 0x1f5   : > { %1141 = vmatmul.mubr.msk.f32.gmra.mrb[18].mxu0 %vm458_vm5, %v1277_v39 }
 0x1f6   : > { %1143 = vmatprep.mubr.msk.f32.mxu0 %vm1374_vm3, %v1375_v4 }
 0x1f8   : > { %v1279_v40 = vpop.eup %1278 }
 0x1f9   : > { %1144 = vmatmul.mubr.msk.f32.gmra.mrb[20].mxu0 %vm458_vm5, %v1279_v40 }
 0x2b4   : > { %v718_v42 = vpop.f32.mrb[8].mxu0 }
 0x2b5   : > { %v719_v43 = vadd.f32 %v1023_v41, %v718_v42  ;;  %v1127_v44 = vpop.f32.mrb[9].mxu0 }
 0x2b7   : > { %753 = vst.msk [vmem:[%s1544_s20] sm:$0xff] %vm752_vm6, %v719_v43 }
 0x2b8   : > { %v723_v4 = vpop.f32.mrb[10].mxu0 }
 0x2b9   : > { %v724_v45 = vadd.f32 %v1023_v41, %v723_v4  ;;  %v1130_v46 = vpop.f32.mrb[11].mxu0 }
 0x2bb   : > { %754 = vst.msk [vmem:[%s1544_s20 + $0x8] sm:$0xff] %vm752_vm6, %v724_v45 }
 0x2bc   : > { %v728_v47 = vpop.f32.mrb[12].mxu0 }
 0x2bd   : > { %v729_v48 = vadd.f32 %v1023_v41, %v728_v47  ;;  %v1133_v49 = vpop.f32.mrb[13].mxu0 }
 0x2bf   : > { %755 = vst.msk [vmem:[%s1544_s20 + $0x10] sm:$0xff] %vm752_vm6, %v729_v48 }
 0x2c0   : > { %v733_v50 = vpop.f32.mrb[14].mxu0 }
 0x2c1   : > { %v734_v51 = vadd.f32 %v1023_v41, %v733_v50  ;;  %v1136_v52 = vpop.f32.mrb[15].mxu0 }
 0x2c3   : > { %756 = vst.msk [vmem:[%s1544_s20 + $0x18] sm:$0xff] %vm752_vm6, %v734_v51 }
 0x2c4   : > { %v738_v53 = vpop.f32.mrb[16].mxu0 }
 0x2c5   : > { %v739_v54 = vadd.f32 %v1023_v41, %v738_v53  ;;  %v1139_v55 = vpop.f32.mrb[17].mxu0 }
 0x2c7   : > { %757 = vst.msk [vmem:[%s1544_s20 + $0x20] sm:$0xff] %vm752_vm6, %v739_v54 }
 0x2c8   : > { %v743_v56 = vpop.f32.mrb[18].mxu0 }
 0x2c9   : > { %v744_v57 = vadd.f32 %v1023_v41, %v743_v56  ;;  %v1142_v58 = vpop.f32.mrb[19].mxu0  ;;  %766 = sbr.rel (!%p1441_p4) target bundleno = 781 (0x30d), region = 52 }
 0x2cb   : > { %758 = vst.msk [vmem:[%s1544_s20 + $0x28] sm:$0xff] %vm752_vm6, %v744_v57 }
 0x2cc   : > { %v748_v59 = vpop.f32.mrb[20].mxu0 }
 0x2cd   : > { %v749_v60 = vadd.f32 %v1023_v41, %v748_v59  ;;  %v1145_v61 = vpop.f32.mrb[21].mxu0 }
 0x2cf   : > { %759 = vst.msk [vmem:[%s1544_s20 + $0x30] sm:$0xff] %vm752_vm6, %v749_v60 }
 0x2d0   : > { %s1632_s24 = smov (!%p769_p8, %s768_s24), 7 }
 0x2d1   : > { %s1031_s29 = sshll.u32 %s1632_s24, 7 }
 0x2d2   : > { %p1034_p9 = scmp.eq.s32.totalorder %s1031_s29, 0 }
 0x2d3   : > { %1280 = sdivrem.u32 (!%p1034_p9), %s1632_s24, 7 }
 0x2d4   : > { %777 = sbr.rel (%p1034_p9) target bundleno = 781 (0x30d), region = 56 }
 0x2dc   : > { %s1573_s9 = spop.drf %1280 }
 0x2dd   : > { %p1035_p10 = scmp.le.s32.totalorder %s1573_s9, 0 }
 0x2de   : > { %s1625_s27 = smov (!%p1035_p10), %s1567_s26  ;;  %s1626_s14 = smov (!%p1035_p10), %s1544_s20 }
 0x2df   : > { %957 = sbr.rel (%p1035_p10) target bundleno = 752 (0x2f0), region = 132  ;;  %s1582_s30 = smov (!%p1035_p10), 0  }
 0x2e0   : > { %s1584_s10 = smov (!%p1035_p10), 0  }
 0x2e6 LB: >> { %v853_v62 = vld [vmem:[%s1346_s14] sm:$0xff]  ;;  %v855_v63 = vld [vmem:[%s1346_s14 + $0x8] sm:$0xff]  ;;  %v857_v0 = vld [vmem:[%s1346_s14 + $0x10] sm:$0xff]  ;;  %s867_s11 = sadd.s32 1, %s1350_s30  ;;  %s847_s10 = sadd.s32 1, %s1354_s10   ;;  %s1354_s10 = sphi %s1584_s10, %s847_s10   ;;  %s1350_s30 = sphi %s1582_s30, %s1627_s30   ;;  %s1346_s14 = sphi %s1626_s14, %s872_s14   ;;  %s1342_s27 = sphi %s1625_s27, %s873_s27  }
 0x2e7   : >> { %854 = vst [vmem:[%s1342_s27] sm:$0xff] %v853_v62  ;;  %856 = vst [vmem:[%s1342_s27 + $0x8] sm:$0xff] %v855_v63  ;;  %v859_v1 = vld [vmem:[%s1346_s14 + $0x18] sm:$0xff]  ;;  %v861_v2 = vld [vmem:[%s1346_s14 + $0x20] sm:$0xff]  ;;  %p868_p11 = scmp.ge.s32.totalorder %s867_s11, %s1573_s9  ;;  %p846_p12 = scmp.ge.s32.totalorder %s847_s10, %s1573_s9 }
 0x2e8   : >> { %858 = vst [vmem:[%s1342_s27 + $0x10] sm:$0xff] %v857_v0  ;;  %v863_v3 = vld [vmem:[%s1346_s14 + $0x28] sm:$0xff]  ;;  %860 = vst [vmem:[%s1342_s27 + $0x18] sm:$0xff] %v859_v1  ;;  %v865_v5 = vld [vmem:[%s1346_s14 + $0x30] sm:$0xff] }
 0x2e9   : >> { %862 = vst [vmem:[%s1342_s27 + $0x20] sm:$0xff] %v861_v2  ;;  %864 = vst [vmem:[%s1342_s27 + $0x28] sm:$0xff] %v863_v3  ;;  %s1634_s11 = smov (%p868_p11, %s867_s11), 0  ;;  %849 = sbr.rel (!%p846_p12) target bundleno = 742 (0x2e6), region = 138 }
 0x2ea   : >> { %866 = vst [vmem:[%s1342_s27 + $0x30] sm:$0xff] %v865_v5  ;;  %s870_s12 = smul.u32 56, %s1634_s11  ;;  %s1627_s30 = smov %s1634_s11 }
 0x2ec   : >> { %s872_s14 = scalar_lea.vmem %s1544_s20, %s870_s12 [#allocation2]   ;;  %s873_s27 = scalar_lea.vmem %s1567_s26, %s870_s12  }
 0x2f0 PF: > { %1282 = sdivrem.u32 %s1632_s24, 7 }
 0x2f1   : > { %s1036_s13 = smul.u32 56, %s1573_s9 }
 0x2f3   : > { %s878_s15 = scalar_lea.vmem %s1544_s20, %s1036_s13 [#allocation2]   ;;  %s880_s16 = scalar_lea.vmem %s1567_s26, %s1036_s13  }
 0x2f9   : > { %s1283_s17 = spop.drf %1282 }
 0x2fa   : > { %p1038_p13 = scmp.le.s32.totalorder %s1283_s17, 0 }
 0x2fb   : > { %s1356_s18 = smov (!%p1038_p13), %s880_s16   ;;  %s1360_s19 = smov (!%p1038_p13), %s878_s15  }
 0x2fc   : > { %971 = sbr.rel (%p1038_p13) target bundleno = 781 (0x30d), region = 143  ;;  %s1364_s21 = smov (!%p1038_p13), 0  }
 0x2fd   : > { %s1368_s22 = smov (!%p1038_p13), 0  }
 0x303 LB: >> { %v890_v6 = vld [vmem:[%s1362_s19] sm:$0xff]  ;;  %s892_s23 = sadd.s32 1, %s1366_s21  ;;  %s884_s22 = sadd.s32 1, %s1370_s22   ;;  %s1370_s22 = sphi %s1368_s22, %s884_s22   ;;  %s1366_s21 = sphi %s1364_s21, %s1365_s21   ;;  %s1362_s19 = sphi %s1360_s19, %s897_s19   ;;  %s1358_s18 = sphi %s1356_s18, %s898_s18  }
 0x304   : >> { %891 = vst [vmem:[%s1358_s18] sm:$0xff] %v890_v6  ;;  %p893_p0 = scmp.ge.s32.totalorder %s892_s23, %s1283_s17  ;;  %p883_p1 = scmp.ge.s32.totalorder %s884_s22, %s1283_s17 }
 0x306   : >> { %s1636_s23 = smov (%p893_p0, %s892_s23), 0  ;;  %886 = sbr.rel (!%p883_p1) target bundleno = 771 (0x303), region = 149 }
 0x307   : >> { %s1039_s20 = sshll.u32 %s1636_s23, 3  ;;  %s1365_s21 = smov %s1636_s23  }
 0x308   : >> { %s897_s19 = scalar_lea.vmem %s878_s15, %s1039_s20 [#allocation2]   ;;  %s898_s18 = scalar_lea.vmem %s880_s16, %s1039_s20  }
 0x30d PF: > { %p14_p2 = scmp.ge.s32.totalorder %s1431_s28, 4   ;;  %s1628_s24 = smov %s1334_s25 }
 0x30e   : > { %s1629_s25 = smov %s1439_s8  ;;  %s1630_s26 = smov %s1431_s28 }
 0x30f   :  { %16 = sbr.rel (!%p14_p2) target bundleno = 2 (0x2), region = 160 }

</bundles_post_ra>
